<compile_context>
chip_gen: v7x
topology: tpu7x:2x2x1
jax: 0.10.0
libtpu: 0.0.40
codegen_flags: <defaults>
</compile_context>

<pallas_src>
import functools

import jax
import jax.numpy as jnp
from jax.experimental import pallas as pl
from jax.experimental.pallas import tpu as pltpu


def _round_up(n, m):
    return pl.cdiv(n, m) * m


@functools.lru_cache(maxsize=None)
def _vmem_budget_bytes():
    """Per-TensorCore VMEM we allow ourselves to request (capacity - headroom)."""
    cap = 64 * 1024 * 1024  # conservative fallback == v7x per-TC capacity
    try:
        info = pltpu.get_tpu_info()
        cap = int(getattr(info, "vmem_capacity_bytes", cap))
    except Exception:
        pass
    # ~16 MiB headroom for Mosaic internal scratch; never below the 32 MiB
    # default scoped limit.
    return max(cap - 16 * 1024 * 1024, 32 * 1024 * 1024)


def _act_vmem_bytes(tile_b, in_p, hid_p, out_p):
    # f32 x tiles and f32 out tiles are double-buffered by the pipeline; up to
    # three (tile_b, hid_p) intermediates are live at once (f32 acc + bf16 copy).
    return (2 * tile_b * in_p * 4
            + 2 * tile_b * out_p * 4
            + 3 * tile_b * hid_p * (4 + 2))


def _pick_tile_b(B, in_p, hid_p, out_p, act_budget):
    """Batch tile: minimize last-tile padding waste, stay inside VMEM budget."""
    if B <= 1024:
        cands = [_round_up(B, 8)]          # single tile, zero padding waste
    else:
        cands = [256, 512, 1024, 2048]     # multiples of 256 (MXU-friendly)
    feasible = [c for c in cands
                if _act_vmem_bytes(c, in_p, hid_p, out_p) <= act_budget]
    if not feasible:
        c = min(cands)
        while c > 8 and _act_vmem_bytes(c, in_p, hid_p, out_p) > act_budget:
            c = max(8, c // 2)
        return c
    # min padding waste; tie-break to larger tile (fewer grid steps -> less
    # per-step pipeline overhead).
    return min(feasible, key=lambda c: (_round_up(B, c) - B, -c))


def mlp_kernel(x_ref, w1_ref, b1_ref, w2_ref, b2_ref,
               w3_ref, b3_ref, w4_ref, b4_ref, o_ref):
    # All four matmuls + activations fused for one (tile_b, F) batch tile.
    # MXU dots in bf16 with f32 accumulation; bias add + LeakyReLU in f32
    # (safe on v5e's no-bf16 VPU).
    def act(h):
        return jnp.maximum(h, 0.2 * h)   # LeakyReLU(0.2): one mul + one max

    x = x_ref[...].astype(jnp.bfloat16)  # cast in-kernel; no wrapper HBM pass
    h = jnp.dot(x, w1_ref[...], preferred_element_type=jnp.float32) + b1_ref[...]
    h = act(h).astype(jnp.bfloat16)
    h = jnp.dot(h, w2_ref[...], preferred_element_type=jnp.float32) + b2_ref[...]
    h = act(h).astype(jnp.bfloat16)
    h = jnp.dot(h, w3_ref[...], preferred_element_type=jnp.float32) + b3_ref[...]
    h = act(h).astype(jnp.bfloat16)
    out = jnp.dot(h, w4_ref[...], preferred_element_type=jnp.float32) + b4_ref[...]
    o_ref[...] = out.astype(o_ref.dtype)


@jax.jit
def mlp_forward(x, params):
    """x: (B, in_size) f32. params: w1..w4 (in,out) and b1..b4 (1,out), f32."""
    B, in_size = x.shape
    hid_size = params["w1"].shape[1]
    out_size = params["w4"].shape[1]

    # Lane-align feature dims so every dot feeds full 128-wide MXU tiles and
    # the output store is an unmasked full-lane vst.
    in_p = _round_up(in_size, 128)
    hid_p = _round_up(hid_size, 128)
    out_p = _round_up(out_size, 128)

    # ---- per-TensorCore VMEM budget --------------------------------------
    budget = _vmem_budget_bytes()
    weight_bytes = 2 * (in_p * hid_p + 2 * hid_p * hid_p + hid_p * out_p)  # bf16
    bias_bytes = 4 * (3 * hid_p + out_p)                                   # f32
    resident_bytes = weight_bytes + bias_bytes   # single-buffered (Buffered(1))
    scratch_bytes = 2 * 1024 * 1024              # compiler internal scratch margin
    min_act = _act_vmem_bytes(8, in_p, hid_p, out_p)
    if resident_bytes + scratch_bytes + min_act > budget:
        # TODO(synk): stream w2/w3 column tiles via a second "arbitrary" grid
        # axis (or pltpu.emit_pipeline) when hid is too large to keep the full
        # weight set resident per-TC (e.g. hid >= ~4K on v7x's 64 MiB).
        raise NotImplementedError(
            f"hid_size={hid_size}: resident weights ({resident_bytes} B) exceed "
            f"per-core VMEM budget ({budget} B); weight streaming not implemented")

    tile_b = _pick_tile_b(B, in_p, hid_p, out_p,
                          budget - resident_bytes - scratch_bytes)
    b_pad = _round_up(B, tile_b)
    grid = (b_pad // tile_b,)

    vmem_est = (resident_bytes + _act_vmem_bytes(tile_b, in_p, hid_p, out_p)
                + scratch_bytes)
    vmem_limit = int(min(budget, max(32 * 1024 * 1024, vmem_est)))

    # ---- operand prep (no wrapper cast of x; zero-pad only where needed) --
    pad_rows, pad_cols = b_pad - B, in_p - in_size
    xp = x if (pad_rows == 0 and pad_cols == 0) else jnp.pad(
        x, ((0, pad_rows), (0, pad_cols)))
    xp = xp.astype(jnp.float32)

    def pad_w(w, rows, cols):
        pr, pc = rows - w.shape[0], cols - w.shape[1]
        w = w if (pr == 0 and pc == 0) else jnp.pad(w, ((0, pr), (0, pc)))
        return w.astype(jnp.bfloat16)

    def pad_bias(b, cols):
        pc = cols - b.shape[1]
        b = b if pc == 0 else jnp.pad(b, ((0, 0), (0, pc)))
        return b.astype(jnp.float32)

    w1 = pad_w(params["w1"], in_p, hid_p);  b1 = pad_bias(params["b1"], hid_p)
    w2 = pad_w(params["w2"], hid_p, hid_p); b2 = pad_bias(params["b2"], hid_p)
    w3 = pad_w(params["w3"], hid_p, hid_p); b3 = pad_bias(params["b3"], hid_p)
    w4 = pad_w(params["w4"], hid_p, out_p); b4 = pad_bias(params["b4"], out_p)

    # Weights/biases: constant index_map (fetched once, stays resident) and a
    # SINGLE pipeline buffer — default double-buffering would double their VMEM.
    def resident(shape):
        return pl.BlockSpec(shape, lambda i: (0, 0),
                            pipeline_mode=pl.Buffered(1))

    flops = 2 * b_pad * (in_p * hid_p + 2 * hid_p * hid_p + hid_p * out_p)
    bytes_accessed = (b_pad * in_p * 4 + weight_bytes + bias_bytes
                      + b_pad * out_p * 4)

    out_padded = pl.pallas_call(
        mlp_kernel,
        out_shape=jax.ShapeDtypeStruct((b_pad, out_p), jnp.float32),
        grid=grid,
        in_specs=[
            pl.BlockSpec((tile_b, in_p), lambda i: (i, 0)),
            resident(w1.shape), resident(b1.shape),
            resident(w2.shape), resident(b2.shape),
            resident(w3.shape), resident(b3.shape),
            resident(w4.shape), resident(b4.shape),
        ],
        out_specs=pl.BlockSpec((tile_b, out_p), lambda i: (i, 0)),
        compiler_params=pltpu.CompilerParams(
            dimension_semantics=("parallel",),  # shard batch over v7x's 2 TCs
            vmem_limit_bytes=vmem_limit,
        ),
        cost_estimate=pl.CostEstimate(
            flops=flops, transcendentals=0, bytes_accessed=bytes_accessed),
    )(xp, w1, b1, w2, b2, w3, b3, w4, b4)

    return out_padded[:B, :out_size]


def init_params(key, in_size, out_size, hid_size, dtype=jnp.float32):
    """Deterministic init mirroring nn.Linear (weights stored as (in, out))."""
    dims = [(in_size, hid_size), (hid_size, hid_size),
            (hid_size, hid_size), (hid_size, out_size)]
    params = {}
    for i, (fan_in, fan_out) in enumerate(dims, start=1):
        key, kw, kb = jax.random.split(key, 3)
        bound = 1.0 / (fan_in ** 0.5)  # PyTorch default Linear init range
        params[f"w{i}"] = jax.random.uniform(
            kw, (fan_in, fan_out), dtype, minval=-bound, maxval=bound)
        params[f"b{i}"] = jax.random.uniform(
            kb, (1, fan_out), dtype, minval=-bound, maxval=bound)
    return params


def mlp_reference(x, params):
    """Pure-JAX f32 reference for correctness check."""
    h = x
    for i in range(1, 4):
        h = h @ params[f"w{i}"] + params[f"b{i}"]
        h = jnp.where(h >= 0, h, 0.2 * h)
    return h @ params["w4"] + params["b4"]


if __name__ == "__main__":
    in_size, hid_size, out_size = 16, 32, 8
    batch = 8

    key = jax.random.PRNGKey(0)
    key, kx = jax.random.split(key)
    x = jax.random.normal(kx, (batch, in_size), jnp.float32)
    params = init_params(key, in_size, out_size, hid_size)

    out = jax.block_until_ready(mlp_forward(x, params))

    ref = mlp_reference(x, params)
    assert out.shape == (batch, out_size)
    # bf16 matmul operands (f32 accumulation) -> loosened tolerance vs f32 ref.
    assert jnp.allclose(out, ref, atol=5e-2, rtol=5e-2), "mismatch vs reference"

    print("KERNEL_OK")
</pallas_src>

<mosaic_0001>
module attributes {stable_mosaic.version = 11 : i64} {
  func.func @mlp_kernel(%arg0: i32, %arg1: memref<8x128xf32, #tpu.memory_space<vmem>>, %arg2: memref<128x128xbf16, #tpu.memory_space<vmem>>, %arg3: memref<1x128xf32, #tpu.memory_space<vmem>>, %arg4: memref<128x128xbf16, #tpu.memory_space<vmem>>, %arg5: memref<1x128xf32, #tpu.memory_space<vmem>>, %arg6: memref<128x128xbf16, #tpu.memory_space<vmem>>, %arg7: memref<1x128xf32, #tpu.memory_space<vmem>>, %arg8: memref<128x128xbf16, #tpu.memory_space<vmem>>, %arg9: memref<1x128xf32, #tpu.memory_space<vmem>>, %arg10: memref<8x128xf32, #tpu.memory_space<vmem>>) attributes {dimension_semantics = [#tpu.dimension_semantics<parallel>], iteration_bounds = array<i64: 1>, scalar_prefetch = 0 : i64, scratch_operands = 0 : i64, tpu.core_type = #tpu.core_type<tc>, window_params = [{transform_indices = @transform_0, window_bounds = array<i64: 8, 128>}, {pipeline_mode = #tpu.pipeline_mode<synchronous>, transform_indices = @transform_1, window_bounds = array<i64: 128, 128>}, {pipeline_mode = #tpu.pipeline_mode<synchronous>, transform_indices = @transform_2, window_bounds = array<i64: 1, 128>}, {pipeline_mode = #tpu.pipeline_mode<synchronous>, transform_indices = @transform_3, window_bounds = array<i64: 128, 128>}, {pipeline_mode = #tpu.pipeline_mode<synchronous>, transform_indices = @transform_4, window_bounds = array<i64: 1, 128>}, {pipeline_mode = #tpu.pipeline_mode<synchronous>, transform_indices = @transform_5, window_bounds = array<i64: 128, 128>}, {pipeline_mode = #tpu.pipeline_mode<synchronous>, transform_indices = @transform_6, window_bounds = array<i64: 1, 128>}, {pipeline_mode = #tpu.pipeline_mode<synchronous>, transform_indices = @transform_7, window_bounds = array<i64: 128, 128>}, {pipeline_mode = #tpu.pipeline_mode<synchronous>, transform_indices = @transform_8, window_bounds = array<i64: 1, 128>}, {transform_indices = @transform_9, window_bounds = array<i64: 8, 128>}]} {
    %c0 = arith.constant 0 : index
    %c0_0 = arith.constant 0 : index
    %0 = vector.load %arg1[%c0, %c0_0] : memref<8x128xf32, #tpu.memory_space<vmem>>, vector<8x128xf32>
    %1 = arith.truncf %0 : vector<8x128xf32> to vector<8x128xbf16>
    %c0_1 = arith.constant 0 : index
    %c0_2 = arith.constant 0 : index
    %2 = vector.load %arg2[%c0_1, %c0_2] : memref<128x128xbf16, #tpu.memory_space<vmem>>, vector<128x128xbf16>
    %cst = arith.constant dense<0.000000e+00> : vector<8x128xf32>
    %3 = tpu.matmul %1, %2, %cst {dimension_numbers = #tpu.dot_dimension_numbers<[1], [0], [0], [1], [0, 0, 1, 1], [], []>} : vector<8x128xbf16>, vector<128x128xbf16>, vector<8x128xf32> -> vector<8x128xf32>
    %c0_3 = arith.constant 0 : index
    %c0_4 = arith.constant 0 : index
    %4 = vector.load %arg3[%c0_3, %c0_4] : memref<1x128xf32, #tpu.memory_space<vmem>>, vector<1x128xf32>
    %5 = vector.broadcast %4 : vector<1x128xf32> to vector<8x128xf32>
    %6 = arith.addf %3, %5 : vector<8x128xf32>
    %cst_5 = arith.constant 2.000000e-01 : f32
    %7 = vector.broadcast %cst_5 : f32 to vector<8x128xf32>
    %8 = arith.mulf %7, %6 : vector<8x128xf32>
    %9 = arith.maximumf %6, %8 : vector<8x128xf32>
    %10 = arith.truncf %9 : vector<8x128xf32> to vector<8x128xbf16>
    %c0_6 = arith.constant 0 : index
    %c0_7 = arith.constant 0 : index
    %11 = vector.load %arg4[%c0_6, %c0_7] : memref<128x128xbf16, #tpu.memory_space<vmem>>, vector<128x128xbf16>
    %cst_8 = arith.constant dense<0.000000e+00> : vector<8x128xf32>
    %12 = tpu.matmul %10, %11, %cst_8 {dimension_numbers = #tpu.dot_dimension_numbers<[1], [0], [0], [1], [0, 0, 1, 1], [], []>} : vector<8x128xbf16>, vector<128x128xbf16>, vector<8x128xf32> -> vector<8x128xf32>
    %c0_9 = arith.constant 0 : index
    %c0_10 = arith.constant 0 : index
    %13 = vector.load %arg5[%c0_9, %c0_10] : memref<1x128xf32, #tpu.memory_space<vmem>>, vector<1x128xf32>
    %14 = vector.broadcast %13 : vector<1x128xf32> to vector<8x128xf32>
    %15 = arith.addf %12, %14 : vector<8x128xf32>
    %cst_11 = arith.constant 2.000000e-01 : f32
    %16 = vector.broadcast %cst_11 : f32 to vector<8x128xf32>
    %17 = arith.mulf %16, %15 : vector<8x128xf32>
    %18 = arith.maximumf %15, %17 : vector<8x128xf32>
    %19 = arith.truncf %18 : vector<8x128xf32> to vector<8x128xbf16>
    %c0_12 = arith.constant 0 : index
    %c0_13 = arith.constant 0 : index
    %20 = vector.load %arg6[%c0_12, %c0_13] : memref<128x128xbf16, #tpu.memory_space<vmem>>, vector<128x128xbf16>
    %cst_14 = arith.constant dense<0.000000e+00> : vector<8x128xf32>
    %21 = tpu.matmul %19, %20, %cst_14 {dimension_numbers = #tpu.dot_dimension_numbers<[1], [0], [0], [1], [0, 0, 1, 1], [], []>} : vector<8x128xbf16>, vector<128x128xbf16>, vector<8x128xf32> -> vector<8x128xf32>
    %c0_15 = arith.constant 0 : index
    %c0_16 = arith.constant 0 : index
    %22 = vector.load %arg7[%c0_15, %c0_16] : memref<1x128xf32, #tpu.memory_space<vmem>>, vector<1x128xf32>
    %23 = vector.broadcast %22 : vector<1x128xf32> to vector<8x128xf32>
    %24 = arith.addf %21, %23 : vector<8x128xf32>
    %cst_17 = arith.constant 2.000000e-01 : f32
    %25 = vector.broadcast %cst_17 : f32 to vector<8x128xf32>
    %26 = arith.mulf %25, %24 : vector<8x128xf32>
    %27 = arith.maximumf %24, %26 : vector<8x128xf32>
    %28 = arith.truncf %27 : vector<8x128xf32> to vector<8x128xbf16>
    %c0_18 = arith.constant 0 : index
    %c0_19 = arith.constant 0 : index
    %29 = vector.load %arg8[%c0_18, %c0_19] : memref<128x128xbf16, #tpu.memory_space<vmem>>, vector<128x128xbf16>
    %cst_20 = arith.constant dense<0.000000e+00> : vector<8x128xf32>
    %30 = tpu.matmul %28, %29, %cst_20 {dimension_numbers = #tpu.dot_dimension_numbers<[1], [0], [0], [1], [0, 0, 1, 1], [], []>} : vector<8x128xbf16>, vector<128x128xbf16>, vector<8x128xf32> -> vector<8x128xf32>
    %c0_21 = arith.constant 0 : index
    %c0_22 = arith.constant 0 : index
    %31 = vector.load %arg9[%c0_21, %c0_22] : memref<1x128xf32, #tpu.memory_space<vmem>>, vector<1x128xf32>
    %32 = vector.broadcast %31 : vector<1x128xf32> to vector<8x128xf32>
    %33 = arith.addf %30, %32 : vector<8x128xf32>
    %c0_23 = arith.constant 0 : index
    %c0_24 = arith.constant 0 : index
    %34 = vector.load %arg10[%c0_23, %c0_24] : memref<8x128xf32, #tpu.memory_space<vmem>>, vector<8x128xf32>
    tpu.vector_store %arg10[%c0_23, %c0_24], %33 {strides = array<i32>} : memref<8x128xf32, #tpu.memory_space<vmem>>, vector<8x128xf32>,
    return
  }
  func.func @transform_0(%arg0: i32) -> (i32, i32) {
    %c0_i32 = arith.constant 0 : i32
    %c0_i32_0 = arith.constant 0 : i32
    return %arg0, %c0_i32 : i32, i32
  }
  func.func @transform_1(%arg0: i32) -> (i32, i32) {
    %c0_i32 = arith.constant 0 : i32
    %c0_i32_0 = arith.constant 0 : i32
    %c0_i32_1 = arith.constant 0 : i32
    return %c0_i32, %c0_i32_0 : i32, i32
  }
  func.func @transform_2(%arg0: i32) -> (i32, i32) {
    %c0_i32 = arith.constant 0 : i32
    %c0_i32_0 = arith.constant 0 : i32
    %c0_i32_1 = arith.constant 0 : i32
    return %c0_i32, %c0_i32_0 : i32, i32
  }
  func.func @transform_3(%arg0: i32) -> (i32, i32) {
    %c0_i32 = arith.constant 0 : i32
    %c0_i32_0 = arith.constant 0 : i32
    %c0_i32_1 = arith.constant 0 : i32
    return %c0_i32, %c0_i32_0 : i32, i32
  }
  func.func @transform_4(%arg0: i32) -> (i32, i32) {
    %c0_i32 = arith.constant 0 : i32
    %c0_i32_0 = arith.constant 0 : i32
    %c0_i32_1 = arith.constant 0 : i32
    return %c0_i32, %c0_i32_0 : i32, i32
  }
  func.func @transform_5(%arg0: i32) -> (i32, i32) {
    %c0_i32 = arith.constant 0 : i32
    %c0_i32_0 = arith.constant 0 : i32
    %c0_i32_1 = arith.constant 0 : i32
    return %c0_i32, %c0_i32_0 : i32, i32
  }
  func.func @transform_6(%arg0: i32) -> (i32, i32) {
    %c0_i32 = arith.constant 0 : i32
    %c0_i32_0 = arith.constant 0 : i32
    %c0_i32_1 = arith.constant 0 : i32
    return %c0_i32, %c0_i32_0 : i32, i32
  }
  func.func @transform_7(%arg0: i32) -> (i32, i32) {
    %c0_i32 = arith.constant 0 : i32
    %c0_i32_0 = arith.constant 0 : i32
    %c0_i32_1 = arith.constant 0 : i32
    return %c0_i32, %c0_i32_0 : i32, i32
  }
  func.func @transform_8(%arg0: i32) -> (i32, i32) {
    %c0_i32 = arith.constant 0 : i32
    %c0_i32_0 = arith.constant 0 : i32
    %c0_i32_1 = arith.constant 0 : i32
    return %c0_i32, %c0_i32_0 : i32, i32
  }
  func.func @transform_9(%arg0: i32) -> (i32, i32) {
    %c0_i32 = arith.constant 0 : i32
    %c0_i32_0 = arith.constant 0 : i32
    return %arg0, %c0_i32 : i32, i32
  }
}

</mosaic_0001>

<bundles_post_ra>
// kernel: mlp_forward.1
= control target key start
LH: loop header
LB: loop body
LE: loop exit
PB: predicated region body
PF: predicated region fallthrough
CT: control target
= control target key end

     0   :  { %v715_v1 = vmov 0.0   ;;  %vm716_vm0 = vmmov 0   ;;  %s931_s0 = inlined_call_operand.vmem [shape: f32[8,128], index: 0, kind: input, shape index: {}]   ;;  %s932_s1 = inlined_call_operand.vmem [shape: bf16[128,128], index: 1, kind: input, shape index: {}]   ;;  %s933_s2 = inlined_call_operand.vmem [shape: f32[1,128], index: 2, kind: input, shape index: {}]   ;;  %s934_s3 = inlined_call_operand.vmem [shape: bf16[128,128], index: 3, kind: input, shape index: {}]   ;;  %s935_s4 = inlined_call_operand.vmem [shape: f32[1,128], index: 4, kind: input, shape index: {}]   ;;  %s936_s5 = inlined_call_operand.vmem [shape: bf16[128,128], index: 5, kind: input, shape index: {}]   ;;  %s937_s6 = inlined_call_operand.vmem [shape: f32[1,128], index: 6, kind: input, shape index: {}]   ;;  %s938_s7 = inlined_call_operand.vmem [shape: bf16[128,128], index: 7, kind: input, shape index: {}]   ;;  %s939_s8 = inlined_call_operand.vmem [shape: f32[1,128], index: 8, kind: input, shape index: {}]   ;;  %s940_s9 = inlined_call_operand.hbm [shape: f32[8,128], index: 9, kind: output, shape index: {}]  }
   0x1   :  { %v659_v0 = vld [vmem:[%s932_s1] sm:$0xff]   ;;  %576 = vmatprep.subr.bf16.mxu0 %v715_v1  ;;  %596 = vmatprep.subr.bf16.mxu1 %v715_v1  ;;  %v660_v2 = vld [vmem:[%s932_s1 + $0x8] sm:$0xff]   ;;  %v661_v3 = vld [vmem:[%s932_s1 + $0x10] sm:$0xff]  }
   0x2   :  { %577 = vmatpush3.bf16.msra.mxu0 %v659_v0  ;;  %592 = vmatprep.mubr.msk.bf16.mxu0 %vm716_vm0, %v715_v1  ;;  %v667_v4 = vld [vmem:[%s934_s3] sm:$0xff]   ;;  %v662_v5 = vld [vmem:[%s932_s1 + $0x18] sm:$0xff]   ;;  %v668_v6 = vld [vmem:[%s934_s3 + $0x8] sm:$0xff]  }
   0x3   :  { %578 = vmatprep.subr.bf16.mxu0 %v715_v1  ;;  %612 = vmatprep.mubr.msk.bf16.mxu1 %vm716_vm0, %v715_v1  ;;  %v663_v7 = vld [vmem:[%s932_s1 + $0x20] sm:$0xff]   ;;  %v669_v8 = vld [vmem:[%s934_s3 + $0x10] sm:$0xff]   ;;  %v664_v9 = vld [vmem:[%s932_s1 + $0x28] sm:$0xff]  }
   0x4   :  { %597 = vmatpush3.bf16.msra.mxu1 %v667_v4  ;;  %v670_v10 = vld [vmem:[%s934_s3 + $0x18] sm:$0xff]   ;;  %v665_v11 = vld [vmem:[%s932_s1 + $0x30] sm:$0xff]   ;;  %v671_v12 = vld [vmem:[%s934_s3 + $0x20] sm:$0xff]  }
   0x5   :  { %598 = vmatprep.subr.bf16.mxu1 %v715_v1  ;;  %v666_v13 = vld [vmem:[%s932_s1 + $0x38] sm:$0xff]   ;;  %v34_v14 = vld [vmem:[%s931_s0] sm:$0xff] }
   0x6   :  { %579 = vmatpush3.bf16.msra.mxu0 %v660_v2 }
   0x7   :  { %580 = vmatprep.subr.bf16.mxu0 %v715_v1 }
   0x8   :  { %599 = vmatpush3.bf16.msra.mxu1 %v668_v6 }
   0x9   :  { %600 = vmatprep.subr.bf16.mxu1 %v715_v1 }
   0xa   :  { %581 = vmatpush3.bf16.msra.mxu0 %v661_v3 }
   0xb   :  { %582 = vmatprep.subr.bf16.mxu0 %v715_v1 }
   0xc   :  { %601 = vmatpush3.bf16.msra.mxu1 %v669_v8 }
   0xd   :  { %602 = vmatprep.subr.bf16.mxu1 %v715_v1 }
   0xe   :  { %583 = vmatpush3.bf16.msra.mxu0 %v662_v5 }
   0xf   :  { %584 = vmatprep.subr.bf16.mxu0 %v715_v1 }
  0x10   :  { %603 = vmatpush3.bf16.msra.mxu1 %v670_v10 }
  0x11   :  { %604 = vmatprep.subr.bf16.mxu1 %v715_v1 }
  0x12   :  { %585 = vmatpush3.bf16.msra.mxu0 %v663_v7 }
  0x13   :  { %586 = vmatprep.subr.bf16.mxu0 %v715_v1 }
  0x16   :  { %587 = vmatpush3.bf16.msra.mxu0 %v664_v9 }
  0x17   :  { %588 = vmatprep.subr.bf16.mxu0 %v715_v1 }
  0x1a   :  { %589 = vmatpush3.bf16.msra.mxu0 %v665_v11 }
  0x1b   :  { %14 = vsyncpa [#allocation3], 0  ;;  %590 = vmatprep.subr.bf16.mxu0 %v715_v1  ;;  %605 = vmatpush3.bf16.msra.mxu1 %v671_v12  ;;  %v672_v15 = vld [vmem:[%s934_s3 + $0x28] sm:$0xff]   ;;  %v35_v16 = vpack.c.bf16 %v34_v14, %v34_v14  ;;  %v673_v17 = vld [vmem:[%s934_s3 + $0x30] sm:$0xff]   ;;  %s717_s11 = smov [#allocation2]  }
  0x1c   :  { %606 = vmatprep.subr.bf16.mxu1 %v715_v1  ;;  %v674_v18 = vld [vmem:[%s934_s3 + $0x38] sm:$0xff]   ;;  %v675_v19 = vld [vmem:[%s936_s5] sm:$0xff]   ;;  %v676_v20 = vld [vmem:[%s936_s5 + $0x8] sm:$0xff]  }
  0x1d   :  { %v677_v21 = vld [vmem:[%s936_s5 + $0x10] sm:$0xff]   ;;  %v678_v22 = vld [vmem:[%s936_s5 + $0x18] sm:$0xff]   ;;  %v679_v23 = vld [vmem:[%s936_s5 + $0x20] sm:$0xff]  }
  0x1e   :  { %591 = vmatpush3.bf16.msra.mxu0 %v666_v13  ;;  %v680_v24 = vld [vmem:[%s936_s5 + $0x28] sm:$0xff]   ;;  %v504_v25 = vld [vmem:[%s933_s2] ss:$0 sm:$0xff]  ;;  %v681_v34 = vld [vmem:[%s936_s5 + $0x30] sm:$0xff]  }
  0x1f   :  { %607 = vmatpush3.bf16.msra.mxu1 %v672_v15  ;;  %616 = vmatprep.subr.bf16.mxu0 %v715_v1  ;;  %v682_v35 = vld [vmem:[%s936_s5 + $0x38] sm:$0xff]   ;;  %v683_v36 = vld [vmem:[%s938_s7] sm:$0xff]   ;;  %v684_v37 = vld [vmem:[%s938_s7 + $0x8] sm:$0xff]  }
  0x20   :  { %608 = vmatprep.subr.bf16.mxu1 %v715_v1  ;;  %v685_v38 = vld [vmem:[%s938_s7 + $0x10] sm:$0xff]   ;;  %v686_v39 = vld [vmem:[%s938_s7 + $0x18] sm:$0xff]   ;;  %v687_v40 = vld [vmem:[%s938_s7 + $0x20] sm:$0xff]  }
  0x21   :  { %593 = vmatmul.mubr.bf16.vlgmr.msra.gmra.mrb[0].mxu0 %v35_v16  ;;  %v688_v41 = vld [vmem:[%s938_s7 + $0x28] sm:$0xff]   ;;  %v513_v42 = vld [vmem:[%s935_s4] ss:$0 sm:$0xff]  ;;  %v689_v51 = vld [vmem:[%s938_s7 + $0x30] sm:$0xff]  }
  0x22   :  { %632 = vmatprep.mubr.msk.bf16.mxu0 %vm716_vm0, %v715_v1  ;;  %617 = vmatpush3.bf16.msra.mxu0 %v675_v19  ;;  %v690_v52 = vld [vmem:[%s938_s7 + $0x38] sm:$0xff]   ;;  %v522_v53 = vld [vmem:[%s937_s6] ss:$0 sm:$0xff]  ;;  %s496_s7 = sshll.u32 %s717_s11, 4  ;;  %s497_s7 = int_to_ptr.vmem [resolvable:$true] %s496_s7 }
  0x23   :  { %609 = vmatpush3.bf16.msra.mxu1 %v673_v17  ;;  %618 = vmatprep.subr.bf16.mxu0 %v715_v1  ;;  %v531_v62 = vld [vmem:[%s939_s8] ss:$0 sm:$0xff]  ;;  %s691_s6 = scalar_lea.vmem %s497_s7, 128  ;;  %p696_p1 = scmp.lt.s32.totalorder %s497_s7, %s497_s7 }
  0x24   :  { %610 = vmatprep.subr.bf16.mxu1 %v715_v1  ;;  %p692_p0 = scmp.ne.s32.totalorder %s497_s7, %s691_s6  ;;  %p697_p2 = scmp.lt.s32.totalorder %s691_s6, %s691_s6 }
  0x26   :  { %619 = vmatpush3.bf16.msra.mxu0 %v676_v20  ;;  %p698_p3 = por %p697_p2, %p696_p1 }
  0x27   :  { %611 = vmatpush3.bf16.msra.mxu1 %v674_v18  ;;  %620 = vmatprep.subr.bf16.mxu0 %v715_v1 }
  0x28   :  { %636 = vmatprep.subr.bf16.mxu1 %v715_v1  ;;  %p699_p4 = pnand %p698_p3, %p692_p0 }
  0x2a   :  { %621 = vmatpush3.bf16.msra.mxu0 %v677_v21 }
  0x2b   :  { %622 = vmatprep.subr.bf16.mxu0 %v715_v1 }
  0x2e   :  { %623 = vmatpush3.bf16.msra.mxu0 %v678_v22 }
  0x2f   :  { %624 = vmatprep.subr.bf16.mxu0 %v715_v1 }
  0x32   :  { %625 = vmatpush3.bf16.msra.mxu0 %v679_v23 }
  0x33   :  { %626 = vmatprep.subr.bf16.mxu0 %v715_v1 }
  0x36   :  { %627 = vmatpush3.bf16.msra.mxu0 %v680_v24 }
  0x37   :  { %628 = vmatprep.subr.bf16.mxu0 %v715_v1 }
  0x3a   :  { %629 = vmatpush3.bf16.msra.mxu0 %v681_v34 }
  0x3b   :  { %630 = vmatprep.subr.bf16.mxu0 %v715_v1 }
  0x3e   :  { %631 = vmatpush3.bf16.msra.mxu0 %v682_v35 }
  0xf4   :  { %v141_v26 = vpop.f32.mrb[0].mxu0 }
  0xf5   :  { %v142_v27 = vadd.f32 %v504_v25, %v141_v26  ;;  %v594_v28 = vpop.f32.mrb[1].mxu0 }
  0xf6   :  { %v144_v29 = vpop.f32.mrb[2].mxu0 }
  0xf7   :  { %v147_v30 = vmul.f32 0.2, %v142_v27  ;;  %v595_v31 = vpop.f32.mrb[3].mxu0 }
  0xf9   :  { %v148_v32 = vmax.f32 %v142_v27, %v147_v30 }
  0xfb   :  { %v149_v33 = vpack.c.bf16 %v148_v32, %v148_v32 }
  0xfd   :  { %613 = vmatmul.mubr.bf16.vlgmr.msra.gmra.mrb[0].mxu1 %v149_v33 }
  0xfe   :  { %652 = vmatprep.mubr.msk.bf16.mxu1 %vm716_vm0, %v715_v1  ;;  %637 = vmatpush3.bf16.msra.mxu1 %v683_v36 }
  0xff   :  { %638 = vmatprep.subr.bf16.mxu1 %v715_v1 }
 0x102   :  { %639 = vmatpush3.bf16.msra.mxu1 %v684_v37 }
 0x103   :  { %640 = vmatprep.subr.bf16.mxu1 %v715_v1 }
 0x106   :  { %641 = vmatpush3.bf16.msra.mxu1 %v685_v38 }
 0x107   :  { %642 = vmatprep.subr.bf16.mxu1 %v715_v1 }
 0x10a   :  { %643 = vmatpush3.bf16.msra.mxu1 %v686_v39 }
 0x10b   :  { %644 = vmatprep.subr.bf16.mxu1 %v715_v1 }
 0x10e   :  { %645 = vmatpush3.bf16.msra.mxu1 %v687_v40 }
 0x10f   :  { %646 = vmatprep.subr.bf16.mxu1 %v715_v1 }
 0x112   :  { %647 = vmatpush3.bf16.msra.mxu1 %v688_v41 }
 0x113   :  { %648 = vmatprep.subr.bf16.mxu1 %v715_v1 }
 0x116   :  { %649 = vmatpush3.bf16.msra.mxu1 %v689_v51 }
 0x117   :  { %650 = vmatprep.subr.bf16.mxu1 %v715_v1 }
 0x11a   :  { %651 = vmatpush3.bf16.msra.mxu1 %v690_v52 }
 0x1d0   :  { %v255_v43 = vpop.f32.mrb[0].mxu1 }
 0x1d1   :  { %v256_v44 = vadd.f32 %v513_v42, %v255_v43  ;;  %v614_v45 = vpop.f32.mrb[1].mxu1 }
 0x1d2   :  { %v258_v46 = vpop.f32.mrb[2].mxu1 }
 0x1d3   :  { %v261_v47 = vmul.f32 0.2, %v256_v44  ;;  %v615_v48 = vpop.f32.mrb[3].mxu1 }
 0x1d5   :  { %v262_v49 = vmax.f32 %v256_v44, %v261_v47 }
 0x1d7   :  { %v263_v50 = vpack.c.bf16 %v262_v49, %v262_v49 }
 0x1d9   :  { %633 = vmatmul.mubr.bf16.vlgmr.msra.gmra.mrb[4].mxu0 %v263_v50 }
 0x2ac   :  { %v369_v54 = vpop.f32.mrb[4].mxu0 }
 0x2ad   :  { %v370_v55 = vadd.f32 %v522_v53, %v369_v54  ;;  %v634_v56 = vpop.f32.mrb[5].mxu0 }
 0x2ae   :  { %v372_v57 = vpop.f32.mrb[6].mxu0 }
 0x2af   :  { %v375_v58 = vmul.f32 0.2, %v370_v55  ;;  %v635_v59 = vpop.f32.mrb[7].mxu0 }
 0x2b1   :  { %v376_v60 = vmax.f32 %v370_v55, %v375_v58 }
 0x2b3   :  { %v377_v61 = vpack.c.bf16 %v376_v60, %v376_v60 }
 0x2b5   :  { %653 = vmatmul.mubr.bf16.vlgmr.msra.gmra.mrb[4].mxu1 %v377_v61 }
 0x388   :  { %v483_v63 = vpop.f32.mrb[4].mxu1 }
 0x389   :  { %v484_v0 = vadd.f32 %v531_v62, %v483_v63  ;;  %v654_v1 = vpop.f32.mrb[5].mxu1 }
 0x38a   :  { %v486_v2 = vpop.f32.mrb[6].mxu1 }
 0x38b   :  { %489 = vst [vmem:[#allocation2] sm:$0xff] %v484_v0  ;;  %v655_v3 = vpop.f32.mrb[7].mxu1 }
 0x38c   :  { %702 = shalt.err (!%p699_p4)
}
 0x38d   :  { %s703_s8 = scalar_lea.hbm %s940_s9, 128 }
 0x38e   :  { %p704_p5 = scmp.ne.s32.totalorder %s940_s9, %s703_s8  ;;  %p707_p6 = scmp.lt.u32.totalorder %s703_s8, %s940_s9 }
 0x390   :  { %p709_p7 = pnand %p707_p6, %p704_p5 }
 0x392   :  { %712 = shalt.err (!%p709_p7)
}
 0x393   :  { %499 = dma.vmem_to_hbm [thread:$0]  %s497_s7, 128, %s940_s9, [#allocation3]  }
 0x394   :  { %713 = dma.done.wait [#allocation3], 128  }
 0x395   :  { %714 = vsyncadd [#allocation3], 4294967168 }
 0x396   :  { %503 = vsyncpa [#allocation3], 1 }

</bundles_post_ra>
